<compile_context>
chip_gen: v7x
topology: tpu7x:2x2x1
jax: 0.10.0
libtpu: 0.0.40
codegen_flags: <defaults>
</compile_context>

<pallas_src>
import jax
import jax.numpy as jnp
from jax.experimental import pallas as pl
from jax.experimental.pallas import tpu as pltpu

EPS = 1e-3  # BatchNorm2d(eps=0.001) per the module spec


def conv_bn_kernel(x_ref, w_ref, p_ref, o_ref):
    # x_ref: (Cin, M)      bf16  NCHW-native flattened activations (M = N*H*W, N=1)
    # w_ref: (tCout, Cin)  bf16  slice of the 1x1 conv weight (OIHW squeeze)
    # p_ref: (tCout, 2)    f32   packed BN params: [:, 0] = gamma, [:, 1] = beta
    # o_ref: (tCout, M)    f32
    # 1x1 convolution as an MXU matmul with f32 accumulation.
    y = jnp.dot(w_ref[...], x_ref[...], preferred_element_type=jnp.float32)

    # BatchNorm (training mode): biased batch statistics over M, two-pass (centered)
    # variance for numerical safety. Everything here stays f32 (VPU/EUP friendly on v5e too).
    inv_m = 1.0 / y.shape[1]
    mean = jnp.sum(y, axis=1, keepdims=True) * inv_m          # (tCout, 1)
    d = y - mean
    var = jnp.sum(d * d, axis=1, keepdims=True) * inv_m       # biased variance
    inv_std = jax.lax.rsqrt(var + EPS)

    p = p_ref[...]
    gamma = p[:, 0:1]                                         # (tCout, 1)
    beta = p[:, 1:2]                                          # (tCout, 1)
    o_ref[...] = d * (inv_std * gamma) + beta

    # TODO(synk): BatchNorm2d running_mean/running_var updates (training-mode side effect)
    # are not produced; only the forward output is computed.


def _ru(v, mult):
    return (v + mult - 1) // mult * mult


def conv2d_batchnorm(x_nchw, w_oihw, gamma, beta, *, compute_dtype=jnp.bfloat16):
    """x_nchw: (N, Cin, H, W); w_oihw: (Cout, Cin, 1, 1); gamma/beta: (Cout,)."""
    n, cin, h, w = x_nchw.shape
    cout = w_oihw.shape[0]
    m = n * h * w

    # NCHW-native glue: for N=1 these reshapes are free (no transpose HLOs).
    if n == 1:
        x_cm = x_nchw.reshape(cin, m)                                 # (Cin, M)
    else:
        x_cm = jnp.transpose(x_nchw, (1, 0, 2, 3)).reshape(cin, m)    # fallback
    x_cm = x_cm.astype(compute_dtype)
    w_mat = w_oihw.reshape(cout, cin).astype(compute_dtype)           # (Cout, Cin)
    params = jnp.stack(
        [gamma.astype(jnp.float32), beta.astype(jnp.float32)], axis=1
    )                                                                 # (Cout, 2)

    # Cout tiling: 2 tiles -> megacore split on v7x + pipelined w / writeback on v5e/v6e.
    if cout % 2 == 0 and (cout // 2) % 8 == 0:
        t_cout = cout // 2
    else:
        t_cout = cout
    n_tiles = cout // t_cout

    # Cost estimate with padded/tiled HBM byte counts (lane dim rounded to 128).
    itemsize = jnp.dtype(compute_dtype).itemsize
    sub = 8 * (4 // itemsize)  # sublane tile: 8 for f32, 16 for bf16
    x_b = _ru(cin, sub) * _ru(m, 128) * itemsize
    w_b = _ru(cout, sub) * _ru(cin, 128) * itemsize
    p_b = _ru(cout, 8) * 128 * 4
    o_b = _ru(cout, 8) * _ru(m, 128) * 4
    cost = pl.CostEstimate(
        flops=2 * m * cin * cout,
        transcendentals=cout,  # rsqrt per output channel
        bytes_accessed=x_b + w_b + p_b + o_b,
    )

    out_cm = pl.pallas_call(
        conv_bn_kernel,
        out_shape=jax.ShapeDtypeStruct((cout, m), jnp.float32),
        grid=(n_tiles,),
        in_specs=[
            pl.BlockSpec((cin, m), lambda i: (0, 0)),        # x: constant -> DMA'd once/core
            pl.BlockSpec((t_cout, cin), lambda i: (i, 0)),   # w tile per step
            pl.BlockSpec((t_cout, 2), lambda i: (i, 0)),     # packed gamma/beta tile
        ],
        out_specs=pl.BlockSpec((t_cout, m), lambda i: (i, 0)),
        compiler_params=pltpu.CompilerParams(
            dimension_semantics=("parallel",)),
        cost_estimate=cost,
    )(x_cm, w_mat, params)

    # (Cout, M) -> (N, Cout, H, W): free reshape for N=1.
    if n == 1:
        return out_cm.reshape(1, cout, h, w)
    return jnp.transpose(out_cm.reshape(cout, n, h, w), (1, 0, 2, 3))


if __name__ == "__main__":
    key = jax.random.PRNGKey(0)
    k_x, k_w, k_g, k_b = jax.random.split(key, 4)

    N, CIN, H, W, COUT = 1, 768, 12, 12, 192

    x209 = jax.random.normal(k_x, (N, CIN, H, W), dtype=jnp.float32)
    # Deterministic synthetic parameters:
    #   Conv2d(768, 192, 1x1, bias=False) + BatchNorm2d(192, eps=0.001, affine=True).
    conv_w = jax.random.normal(k_w, (COUT, CIN, 1, 1), dtype=jnp.float32) * 0.02
    bn_gamma = 1.0 + 0.1 * jax.random.normal(k_g, (COUT,), dtype=jnp.float32)
    bn_beta = 0.1 * jax.random.normal(k_b, (COUT,), dtype=jnp.float32)

    out = conv2d_batchnorm(x209, conv_w, bn_gamma, bn_beta)
    out = jax.block_until_ready(out)

    assert out.shape == (N, COUT, H, W), out.shape

    # Pure-JAX reference (f32 HIGHEST precision); loose tolerance since kernel
    # uses bf16 MXU operands (BN output is ~unit scale, bf16 error is ~1e-2 at most).
    y_ref = jnp.einsum(
        "nchw,oc->nohw", x209, conv_w.reshape(COUT, CIN),
        precision=jax.lax.Precision.HIGHEST)
    mean = y_ref.mean(axis=(0, 2, 3), keepdims=True)
    var = y_ref.var(axis=(0, 2, 3), keepdims=True)
    ref = ((y_ref - mean) * jax.lax.rsqrt(var + EPS)
           * bn_gamma.reshape(1, COUT, 1, 1) + bn_beta.reshape(1, COUT, 1, 1))
    assert bool(jnp.allclose(out, ref, atol=0.1, rtol=0.0)), \
        float(jnp.max(jnp.abs(out - ref)))

    print("KERNEL_OK")
</pallas_src>

<mosaic_0001>
module attributes {stable_mosaic.version = 11 : i64} {
  func.func @conv_bn_kernel(%arg0: i32, %arg1: memref<768x144xbf16, #tpu.memory_space<vmem>>, %arg2: memref<96x768xbf16, #tpu.memory_space<vmem>>, %arg3: memref<96x2xf32, #tpu.memory_space<vmem>>, %arg4: memref<96x144xf32, #tpu.memory_space<vmem>>) attributes {dimension_semantics = [#tpu.dimension_semantics<parallel>], iteration_bounds = array<i64: 2>, scalar_prefetch = 0 : i64, scratch_operands = 0 : i64, tpu.core_type = #tpu.core_type<tc>, window_params = [{pipeline_mode = #tpu.pipeline_mode<synchronous>, transform_indices = @transform_0, window_bounds = array<i64: 768, 144>}, {transform_indices = @transform_1, window_bounds = array<i64: 96, 768>}, {transform_indices = @transform_2, window_bounds = array<i64: 96, 2>}, {transform_indices = @transform_3, window_bounds = array<i64: 96, 144>}]} {
    %c0 = arith.constant 0 : index
    %c0_0 = arith.constant 0 : index
    %0 = vector.load %arg2[%c0, %c0_0] : memref<96x768xbf16, #tpu.memory_space<vmem>>, vector<96x768xbf16>
    %c0_1 = arith.constant 0 : index
    %c0_2 = arith.constant 0 : index
    %1 = vector.load %arg1[%c0_1, %c0_2] : memref<768x144xbf16, #tpu.memory_space<vmem>>, vector<768x144xbf16>
    %cst = arith.constant dense<0.000000e+00> : vector<96x144xf32>
    %2 = tpu.matmul %0, %1, %cst {dimension_numbers = #tpu.dot_dimension_numbers<[1], [0], [0], [1], [0, 0, 1, 1], [], []>} : vector<96x768xbf16>, vector<768x144xbf16>, vector<96x144xf32> -> vector<96x144xf32>
    %cst_3 = arith.constant dense<0.000000e+00> : vector<96xf32>
    %3 = vector.multi_reduction <add>, %2, %cst_3 [1] : vector<96x144xf32> to vector<96xf32>
    %4 = vector.shape_cast %3 : vector<96xf32> to vector<96x1xf32>
    %cst_4 = arith.constant 0.0069444445 : f32
    %5 = vector.broadcast %cst_4 : f32 to vector<96x1xf32>
    %6 = arith.mulf %4, %5 : vector<96x1xf32>
    %7 = vector.broadcast %6 : vector<96x1xf32> to vector<96x144xf32>
    %8 = arith.subf %2, %7 : vector<96x144xf32>
    %9 = arith.mulf %8, %8 : vector<96x144xf32>
    %cst_5 = arith.constant dense<0.000000e+00> : vector<96xf32>
    %10 = vector.multi_reduction <add>, %9, %cst_5 [1] : vector<96x144xf32> to vector<96xf32>
    %11 = vector.shape_cast %10 : vector<96xf32> to vector<96x1xf32>
    %cst_6 = arith.constant 0.0069444445 : f32
    %12 = vector.broadcast %cst_6 : f32 to vector<96x1xf32>
    %13 = arith.mulf %11, %12 : vector<96x1xf32>
    %cst_7 = arith.constant 1.000000e-03 : f32
    %14 = vector.broadcast %cst_7 : f32 to vector<96x1xf32>
    %15 = arith.addf %13, %14 : vector<96x1xf32>
    %16 = math.rsqrt %15 : vector<96x1xf32>
    %c0_8 = arith.constant 0 : index
    %c0_9 = arith.constant 0 : index
    %17 = vector.load %arg3[%c0_8, %c0_9] : memref<96x2xf32, #tpu.memory_space<vmem>>, vector<96x2xf32>
    %18 = vector.extract_strided_slice %17 {offsets = [0, 0], sizes = [96, 1], strides = [1, 1]} : vector<96x2xf32> to vector<96x1xf32>
    %19 = vector.extract_strided_slice %17 {offsets = [0, 1], sizes = [96, 1], strides = [1, 1]} : vector<96x2xf32> to vector<96x1xf32>
    %20 = arith.mulf %16, %18 : vector<96x1xf32>
    %21 = vector.broadcast %20 : vector<96x1xf32> to vector<96x144xf32>
    %22 = arith.mulf %8, %21 : vector<96x144xf32>
    %23 = vector.broadcast %19 : vector<96x1xf32> to vector<96x144xf32>
    %24 = arith.addf %22, %23 : vector<96x144xf32>
    %c0_10 = arith.constant 0 : index
    %c0_11 = arith.constant 0 : index
    %25 = vector.load %arg4[%c0_10, %c0_11] : memref<96x144xf32, #tpu.memory_space<vmem>>, vector<96x144xf32>
    tpu.vector_store %arg4[%c0_10, %c0_11], %24 {strides = array<i32>} : memref<96x144xf32, #tpu.memory_space<vmem>>, vector<96x144xf32>,
    return
  }
  func.func @transform_0(%arg0: i32) -> (i32, i32) {
    %c0_i32 = arith.constant 0 : i32
    %c0_i32_0 = arith.constant 0 : i32
    %c0_i32_1 = arith.constant 0 : i32
    return %c0_i32, %c0_i32_0 : i32, i32
  }
  func.func @transform_1(%arg0: i32) -> (i32, i32) {
    %c0_i32 = arith.constant 0 : i32
    %c0_i32_0 = arith.constant 0 : i32
    return %arg0, %c0_i32 : i32, i32
  }
  func.func @transform_2(%arg0: i32) -> (i32, i32) {
    %c0_i32 = arith.constant 0 : i32
    %c0_i32_0 = arith.constant 0 : i32
    return %arg0, %c0_i32 : i32, i32
  }
  func.func @transform_3(%arg0: i32) -> (i32, i32) {
    %c0_i32 = arith.constant 0 : i32
    %c0_i32_0 = arith.constant 0 : i32
    return %arg0, %c0_i32 : i32, i32
  }
}

</mosaic_0001>

<bundles_post_ra>
// kernel: tpu_custom_call.1
= control target key start
LH: loop header
LB: loop body
LE: loop exit
PB: predicated region body
PF: predicated region fallthrough
CT: control target
= control target key end

     0   :  { %s2244_s12 = smov 0   ;;  %s2965_s0 = inlined_call_operand.vmem [shape: bf16[768,144], index: 0, kind: input, shape index: {}]   ;;  %s2966_s1 = inlined_call_operand.vmem [shape: bf16[192,768], index: 1, kind: input, shape index: {}]   ;;  %s2967_s2 = inlined_call_operand.vmem [shape: f32[192,2], index: 2, kind: input, shape index: {}]   ;;  %s2968_s3 = inlined_call_operand.vmem [shape: f32[192,144], index: 3, kind: output, shape index: {}]  }
   0x1 LB: > { %s1751_s13 = sadd.s32 4294967295, %s2220_s12   ;;  %p1755_p0 = scmp.ge.s32.totalorder %s2220_s12, 1  ;;  %s2220_s12 = sphi %s2244_s12, %s13_s12  }
   0x2   : > { %p150_p1 = scmp.lt.s32.totalorder %s2220_s12, 3 }
   0x4   : > { %p151_p2 = pnand %p1755_p0, %p150_p1 }
   0x5   : > { %v1992_v0 = vld [vmem:[%s2965_s0 + $0x4] ss:$8 sps:$4 sm:$0xff] (!%p151_p2)   ;;  %v1996_v2 = vld [vmem:[%s2965_s0] ss:$8 sps:$4 sm:$0xff] (!%p151_p2)   ;;  %v1998_v4 = vld [vmem:[%s2965_s0 + $0x14] ss:$8 sps:$4 sm:$0xff] (!%p151_p2)  }
   0x6   : > { %154 = sbr.rel (%p151_p2) target bundleno = 877 (0x36d), region = 32  ;;  %v1994_v1 = vld [vmem:[%s2965_s0 + $0x104] ss:$8 sps:$4 sm:$0xff] (!%p151_p2)   ;;  %993 = vmatprep.subr.bf16.mxu1 (!%p151_p2), %v1992_v0  ;;  %v1997_v3 = vld [vmem:[%s2965_s0 + $0x100] ss:$8 sps:$4 sm:$0xff] (!%p151_p2)   ;;  %vm1272_vm0 = vcmask (!%p151_p2), 130048  }
   0x7   : > { %1086 = vmatprep.subr.bf16.mxu0 (!%p151_p2), %v1994_v1  ;;  %994 = vmatpush1.bf16.msra.mxu1 (!%p151_p2), %v1996_v2  ;;  %v2000_v5 = vld [vmem:[%s2965_s0 + $0x114] ss:$8 sps:$4 sm:$0xff] (!%p151_p2)   ;;  %v2002_v6 = vld [vmem:[%s2965_s0 + $0x10] ss:$8 sps:$4 sm:$0xff] (!%p151_p2)   ;;  %v2004_v8 = vld [vmem:[%s2965_s0 + $0x24] ss:$8 sps:$4 sm:$0xff] (!%p151_p2)  }
   0x8   : > { %1087 = vmatpush1.bf16.msra.mxu0 (!%p151_p2), %v1997_v3  ;;  %995 = vmatprep.subr.bf16.mxu1 (!%p151_p2), %v1998_v4  ;;  %v2003_v7 = vld [vmem:[%s2965_s0 + $0x110] ss:$8 sps:$4 sm:$0xff] (!%p151_p2)   ;;  %v2006_v9 = vld [vmem:[%s2965_s0 + $0x124] ss:$8 sps:$4 sm:$0xff] (!%p151_p2)   ;;  %v2008_v10 = vld [vmem:[%s2965_s0 + $0x20] ss:$8 sps:$4 sm:$0xff] (!%p151_p2)  }
   0x9   : > { %1088 = vmatprep.subr.bf16.mxu0 (!%p151_p2), %v2000_v5  ;;  %v2009_v11 = vld [vmem:[%s2965_s0 + $0x120] ss:$8 sps:$4 sm:$0xff] (!%p151_p2)   ;;  %v2010_v12 = vld [vmem:[%s2965_s0 + $0x34] ss:$8 sps:$4 sm:$0xff] (!%p151_p2)   ;;  %v2014_v14 = vld [vmem:[%s2965_s0 + $0x30] ss:$8 sps:$4 sm:$0xff] (!%p151_p2)  }
   0xa   : > { %v2012_v13 = vld [vmem:[%s2965_s0 + $0x134] ss:$8 sps:$4 sm:$0xff] (!%p151_p2)   ;;  %v2015_v15 = vld [vmem:[%s2965_s0 + $0x130] ss:$8 sps:$4 sm:$0xff] (!%p151_p2)   ;;  %v2016_v16 = vld [vmem:[%s2965_s0 + $0x44] ss:$8 sps:$4 sm:$0xff] (!%p151_p2)  }
   0xb   : > { %996 = vmatpush1.bf16.msra.mxu1 (!%p151_p2), %v2002_v6  ;;  %v2018_v17 = vld [vmem:[%s2965_s0 + $0x144] ss:$8 sps:$4 sm:$0xff] (!%p151_p2)   ;;  %v2020_v18 = vld [vmem:[%s2965_s0 + $0x40] ss:$8 sps:$4 sm:$0xff] (!%p151_p2)   ;;  %v2022_v20 = vld [vmem:[%s2965_s0 + $0x54] ss:$8 sps:$4 sm:$0xff] (!%p151_p2)  }
   0xc   : > { %1089 = vmatpush1.bf16.msra.mxu0 (!%p151_p2), %v2003_v7  ;;  %997 = vmatprep.subr.bf16.mxu1 (!%p151_p2), %v2004_v8  ;;  %v2021_v19 = vld [vmem:[%s2965_s0 + $0x140] ss:$8 sps:$4 sm:$0xff] (!%p151_p2)   ;;  %v2024_v21 = vld [vmem:[%s2965_s0 + $0x154] ss:$8 sps:$4 sm:$0xff] (!%p151_p2)   ;;  %v2026_v22 = vld [vmem:[%s2965_s0 + $0x50] ss:$8 sps:$4 sm:$0xff] (!%p151_p2)  }
   0xd   : > { %1090 = vmatprep.subr.bf16.mxu0 %v2006_v9  ;;  %v2027_v23 = vld [vmem:[%s2965_s0 + $0x150] ss:$8 sps:$4 sm:$0xff]   ;;  %v2028_v24 = vld [vmem:[%s2965_s0 + $0x64] ss:$8 sps:$4 sm:$0xff]   ;;  %v2032_v26 = vld [vmem:[%s2965_s0 + $0x60] ss:$8 sps:$4 sm:$0xff]  }
   0xe   : > { %v2030_v25 = vld [vmem:[%s2965_s0 + $0x164] ss:$8 sps:$4 sm:$0xff]   ;;  %v2033_v27 = vld [vmem:[%s2965_s0 + $0x160] ss:$8 sps:$4 sm:$0xff]   ;;  %v2034_v28 = vld [vmem:[%s2965_s0 + $0x74] ss:$8 sps:$4 sm:$0xff]  }
   0xf   : > { %998 = vmatpush1.bf16.msra.mxu1 %v2008_v10  ;;  %s181_s22 = smul.u32 12, %s1751_s13  ;;  %v2036_v29 = vld [vmem:[%s2965_s0 + $0x174] ss:$8 sps:$4 sm:$0xff]   ;;  %v2038_v30 = vld [vmem:[%s2965_s0 + $0x70] ss:$8 sps:$4 sm:$0xff]  }
  0x10   : > { %1091 = vmatpush1.bf16.msra.mxu0 %v2009_v11  ;;  %999 = vmatprep.subr.bf16.mxu1 %v2010_v12  ;;  %v2039_v31 = vld [vmem:[%s2965_s0 + $0x170] ss:$8 sps:$4 sm:$0xff]   ;;  %v2040_v32 = vld [vmem:[%s2965_s0 + $0x84] ss:$8 sps:$4 sm:$0xff]   ;;  %v2044_v34 = vld [vmem:[%s2965_s0 + $0x80] ss:$8 sps:$4 sm:$0xff]  }
  0x11   : > { %1092 = vmatprep.subr.bf16.mxu0 %v2012_v13  ;;  %p182_p3 = scmp.lt.s32.totalorder %s181_s22, 23  ;;  %v2042_v33 = vld [vmem:[%s2965_s0 + $0x184] ss:$8 sps:$4 sm:$0xff]   ;;  %v2045_v35 = vld [vmem:[%s2965_s0 + $0x180] ss:$8 sps:$4 sm:$0xff]  }
  0x12   : > { %v2046_v36 = vld [vmem:[%s2965_s0 + $0x94] ss:$8 sps:$4 sm:$0xff]   ;;  %v2050_v38 = vld [vmem:[%s2965_s0 + $0x90] ss:$8 sps:$4 sm:$0xff]   ;;  %v2052_v40 = vld [vmem:[%s2965_s0 + $0xa4] ss:$8 sps:$4 sm:$0xff]  }
  0x13   : > { %1000 = vmatpush1.bf16.msra.mxu1 %v2014_v14  ;;  %s2970_s22 = smov (!%p182_p3, %s181_s22), 23  ;;  %v2048_v37 = vld [vmem:[%s2965_s0 + $0x194] ss:$8 sps:$4 sm:$0xff]   ;;  %v2051_v39 = vld [vmem:[%s2965_s0 + $0x190] ss:$8 sps:$4 sm:$0xff]  }
  0x14   : > { %1093 = vmatpush1.bf16.msra.mxu0 %v2015_v15  ;;  %1001 = vmatprep.subr.bf16.mxu1 %v2016_v16  ;;  %s1975_s21 = smul.u32 24, %s2970_s22  ;;  %v2054_v41 = vld [vmem:[%s2965_s0 + $0x1a4] ss:$8 sps:$4 sm:$0xff]   ;;  %v2056_v42 = vld [vmem:[%s2965_s0 + $0xa0] ss:$8 sps:$4 sm:$0xff]   ;;  %s1894_s17 = sshll.u32 %s2970_s22, 4 }
  0x15   : > { %1094 = vmatprep.subr.bf16.mxu0 %v2018_v17  ;;  %v2057_v43 = vld [vmem:[%s2965_s0 + $0x1a0] ss:$8 sps:$4 sm:$0xff]   ;;  %v2058_v44 = vld [vmem:[%s2965_s0 + $0xb4] ss:$8 sps:$4 sm:$0xff]   ;;  %v2062_v46 = vld [vmem:[%s2965_s0 + $0xb0] ss:$8 sps:$4 sm:$0xff]   ;;  %s2898_s20 = scalar_lea.vmem %s2968_s3, %s1894_s17 }
  0x16   : > { %s2395_s5 = scalar_lea.vmem %s2966_s1, %s1975_s21  ;;  %v2060_v45 = vld [vmem:[%s2965_s0 + $0x1b4] ss:$8 sps:$4 sm:$0xff]   ;;  %v2063_v47 = vld [vmem:[%s2965_s0 + $0x1b0] ss:$8 sps:$4 sm:$0xff]   ;;  %v2064_v48 = vld [vmem:[%s2965_s0 + $0xc4] ss:$8 sps:$4 sm:$0xff]  }
  0x17   : > { %1002 = vmatpush1.bf16.msra.mxu1 %v2020_v18  ;;  %v2090_v49 = vld [vmem:[%s2395_s5 + $0x4] ss:$24 sps:$4 sm:$0xff]   ;;  %v2068_v52 = vld [vmem:[%s2965_s0 + $0xc0] ss:$8 sps:$4 sm:$0xff]   ;;  %v2074_v56 = vld [vmem:[%s2965_s0 + $0xd0] ss:$8 sps:$4 sm:$0xff]  }
  0x18   : > { %1095 = vmatpush1.bf16.msra.mxu0 %v2021_v19  ;;  %1003 = vmatprep.subr.bf16.mxu1 %v2022_v20  ;;  %v2066_v50 = vld [vmem:[%s2965_s0 + $0x1c4] ss:$8 sps:$4 sm:$0xff]   ;;  %v2069_v53 = vld [vmem:[%s2965_s0 + $0x1c0] ss:$8 sps:$4 sm:$0xff]   ;;  %v2070_v54 = vld [vmem:[%s2965_s0 + $0xd4] ss:$8 sps:$4 sm:$0xff]  }
  0x19   : > { %1096 = vmatprep.subr.bf16.mxu0 %v2024_v21  ;;  %v2093_v51 = vld [vmem:[%s2395_s5 + $0xc] ss:$24 sps:$4 sm:$0xff]   ;;  %1025 = vmatprep.mubr.bf16.mxu1 %v2090_v49  ;;  %v2072_v55 = vld [vmem:[%s2965_s0 + $0x1d4] ss:$8 sps:$4 sm:$0xff]   ;;  %v2075_v57 = vld [vmem:[%s2965_s0 + $0x1d0] ss:$8 sps:$4 sm:$0xff]  }
  0x1a   : > { %1118 = vmatprep.mubr.bf16.mxu0 %v2093_v51  ;;  %v2076_v58 = vld [vmem:[%s2965_s0 + $0xe4] ss:$8 sps:$4 sm:$0xff]   ;;  %v2080_v60 = vld [vmem:[%s2965_s0 + $0xe0] ss:$8 sps:$4 sm:$0xff]   ;;  %v2082_v62 = vld [vmem:[%s2965_s0 + $0xf4] ss:$8 sps:$4 sm:$0xff]  }
  0x1b   : > { %1004 = vmatpush1.bf16.msra.mxu1 %v2026_v22  ;;  %v2078_v59 = vld [vmem:[%s2965_s0 + $0x1e4] ss:$8 sps:$4 sm:$0xff]   ;;  %v2081_v61 = vld [vmem:[%s2965_s0 + $0x1e0] ss:$8 sps:$4 sm:$0xff]   ;;  %v2084_v63 = vld [vmem:[%s2965_s0 + $0x1f4] ss:$8 sps:$4 sm:$0xff]  }
  0x1c   : > { %1097 = vmatpush1.bf16.msra.mxu0 %v2027_v23  ;;  %1005 = vmatprep.subr.bf16.mxu1 %v2028_v24  ;;  %v2086_v0 = vld [vmem:[%s2965_s0 + $0xf0] ss:$8 sps:$4 sm:$0xff]   ;;  %v2096_v2 = vld [vmem:[%s2965_s0 + $0x204] ss:$8 sps:$4 sm:$0xff]   ;;  %v2091_v4 = vld [vmem:[%s2395_s5 + $0x8] ss:$24 sps:$4 sm:$0xff]  }
  0x1d   : > { %1098 = vmatprep.subr.bf16.mxu0 %v2030_v25  ;;  %v2087_v1 = vld [vmem:[%s2965_s0 + $0x1f0] ss:$8 sps:$4 sm:$0xff]   ;;  %v2094_v5 = vld [vmem:[%s2965_s0 + $0x200] ss:$8 sps:$4 sm:$0xff]   ;;  %v2099_v6 = vld [vmem:[%s2965_s0 + $0x214] ss:$8 sps:$4 sm:$0xff]  }
  0x1e   : > { %v2088_v3 = vld [vmem:[%s2395_s5] ss:$24 sps:$4 sm:$0xff]   ;;  %v2109_v7 = vld [vmem:[%s2395_s5 + $0x34] ss:$24 sps:$4 sm:$0xff]   ;;  %v2116_v12 = vld [vmem:[%s2395_s5 + $0x30] ss:$24 sps:$4 sm:$0xff]  }
  0x1f   : > { %1006 = vmatpush1.bf16.msra.mxu1 %v2032_v26  ;;  %v2111_v8 = vld [vmem:[%s2395_s5 + $0x3c] ss:$24 sps:$4 sm:$0xff]   ;;  %v2097_v9 = vld [vmem:[%s2965_s0 + $0x210] ss:$8 sps:$4 sm:$0xff]   ;;  %v2102_v10 = vld [vmem:[%s2965_s0 + $0x224] ss:$8 sps:$4 sm:$0xff]  }
  0x20   : > { %1099 = vmatpush1.bf16.msra.mxu0 %v2033_v27  ;;  %1007 = vmatprep.subr.bf16.mxu1 %v2034_v28  ;;  %v2100_v11 = vld [vmem:[%s2965_s0 + $0x220] ss:$8 sps:$4 sm:$0xff]   ;;  %v2117_v13 = vld [vmem:[%s2395_s5 + $0x38] ss:$24 sps:$4 sm:$0xff]   ;;  %v2105_v14 = vld [vmem:[%s2965_s0 + $0x234] ss:$8 sps:$4 sm:$0xff]  }
  0x21   : > { %1100 = vmatprep.subr.bf16.mxu0 %v2036_v29  ;;  %v2121_v15 = vld [vmem:[%s2395_s5 + $0x64] ss:$24 sps:$4 sm:$0xff]   ;;  %v2103_v17 = vld [vmem:[%s2965_s0 + $0x230] ss:$8 sps:$4 sm:$0xff]   ;;  %v2129_v20 = vld [vmem:[%s2395_s5 + $0x68] ss:$24 sps:$4 sm:$0xff]  }
  0x22   : > { %v2123_v16 = vld [vmem:[%s2395_s5 + $0x6c] ss:$24 sps:$4 sm:$0xff]   ;;  %v2128_v19 = vld [vmem:[%s2395_s5 + $0x60] ss:$24 sps:$4 sm:$0xff]   ;;  %v2115_v22 = vld [vmem:[%s2965_s0 + $0x254] ss:$8 sps:$4 sm:$0xff]  }
  0x23   : > { %1008 = vmatpush1.bf16.msra.mxu1 %v2038_v30  ;;  %v2108_v18 = vld [vmem:[%s2965_s0 + $0x244] ss:$8 sps:$4 sm:$0xff]   ;;  %v2106_v21 = vld [vmem:[%s2965_s0 + $0x240] ss:$8 sps:$4 sm:$0xff]   ;;  %v2135_v24 = vld [vmem:[%s2395_s5 + $0x9c] ss:$24 sps:$4 sm:$0xff]  }
  0x24   : > { %1101 = vmatpush1.bf16.msra.mxu0 %v2039_v31  ;;  %1009 = vmatprep.subr.bf16.mxu1 %v2040_v32  ;;  %v2133_v23 = vld [vmem:[%s2395_s5 + $0x94] ss:$24 sps:$4 sm:$0xff]   ;;  %v2113_v25 = vld [vmem:[%s2965_s0 + $0x250] ss:$8 sps:$4 sm:$0xff]   ;;  %v2118_v29 = vld [vmem:[%s2965_s0 + $0x260] ss:$8 sps:$4 sm:$0xff]  }
  0x25   : > { %1102 = vmatprep.subr.bf16.mxu0 %v2042_v33  ;;  %v2120_v26 = vld [vmem:[%s2965_s0 + $0x264] ss:$8 sps:$4 sm:$0xff]   ;;  %v2140_v27 = vld [vmem:[%s2395_s5 + $0x90] ss:$24 sps:$4 sm:$0xff]   ;;  %v2127_v30 = vld [vmem:[%s2965_s0 + $0x274] ss:$8 sps:$4 sm:$0xff]  }
  0x26   : > { %v2141_v28 = vld [vmem:[%s2395_s5 + $0x98] ss:$24 sps:$4 sm:$0xff]   ;;  %v2145_v31 = vld [vmem:[%s2395_s5 + $0xc4] ss:$24 sps:$4 sm:$0xff]   ;;  %v2154_v51 = vld [vmem:[%s2965_s0 + $0x2c0] ss:$8 sps:$4 sm:$0xff]  }
  0x27   : > { %1010 = vmatpush1.bf16.msra.mxu1 %v2044_v34  ;;  %v2147_v32 = vld [vmem:[%s2395_s5 + $0xcc] ss:$24 sps:$4 sm:$0xff]   ;;  %v2125_v33 = vld [vmem:[%s2965_s0 + $0x270] ss:$8 sps:$4 sm:$0xff]  }
  0x28   : > { %1103 = vmatpush1.bf16.msra.mxu0 %v2045_v35  ;;  %1011 = vmatprep.subr.bf16.mxu1 %v2046_v36  ;;  %v2132_v34 = vld [vmem:[%s2965_s0 + $0x284] ss:$8 sps:$4 sm:$0xff]   ;;  %v2152_v35 = vld [vmem:[%s2395_s5 + $0xc0] ss:$24 sps:$4 sm:$0xff]  }
  0x29   : > { %1104 = vmatprep.subr.bf16.mxu0 %v2048_v37  ;;  %v2153_v36 = vld [vmem:[%s2395_s5 + $0xc8] ss:$24 sps:$4 sm:$0xff]   ;;  %v2149_v49 = vld [vmem:[%s2965_s0 + $0x2b0] ss:$8 sps:$4 sm:$0xff]  }
  0x2a   : > { %v2130_v37 = vld [vmem:[%s2965_s0 + $0x280] ss:$8 sps:$4 sm:$0xff]  }
  0x2b   : > { %1012 = vmatpush1.bf16.msra.mxu1 %v2050_v38  ;;  %v2139_v38 = vld [vmem:[%s2965_s0 + $0x294] ss:$8 sps:$4 sm:$0xff]  }
  0x2c   : > { %1105 = vmatpush1.bf16.msra.mxu0 %v2051_v39  ;;  %1013 = vmatprep.subr.bf16.mxu1 %v2052_v40  ;;  %v2157_v39 = vld [vmem:[%s2395_s5 + $0xf4] ss:$24 sps:$4 sm:$0xff]  }
  0x2d   : > { %1106 = vmatprep.subr.bf16.mxu0 %v2054_v41  ;;  %v2159_v40 = vld [vmem:[%s2395_s5 + $0xfc] ss:$24 sps:$4 sm:$0xff]   ;;  %v2137_v41 = vld [vmem:[%s2965_s0 + $0x290] ss:$8 sps:$4 sm:$0xff]  }
  0x2f   : > { %1014 = vmatpush1.bf16.msra.mxu1 %v2056_v42  ;;  %v2144_v42 = vld [vmem:[%s2965_s0 + $0x2a4] ss:$8 sps:$4 sm:$0xff]  }
  0x30   : > { %1107 = vmatpush1.bf16.msra.mxu0 %v2057_v43  ;;  %1015 = vmatprep.subr.bf16.mxu1 %v2058_v44  ;;  %v2164_v43 = vld [vmem:[%s2395_s5 + $0xf0] ss:$24 sps:$4 sm:$0xff]  }
  0x31   : > { %1108 = vmatprep.subr.bf16.mxu0 %v2060_v45  ;;  %v2165_v44 = vld [vmem:[%s2395_s5 + $0xf8] ss:$24 sps:$4 sm:$0xff]   ;;  %v2142_v45 = vld [vmem:[%s2965_s0 + $0x2a0] ss:$8 sps:$4 sm:$0xff]  }
  0x33   : > { %1016 = vmatpush1.bf16.msra.mxu1 %v2062_v46  ;;  %v2151_v46 = vld [vmem:[%s2965_s0 + $0x2b4] ss:$8 sps:$4 sm:$0xff]  }
  0x34   : > { %1109 = vmatpush1.bf16.msra.mxu0 %v2063_v47  ;;  %1017 = vmatprep.subr.bf16.mxu1 %v2064_v48  ;;  %v2174_v47 = vld [vmem:[%s2395_s5 + $0x14] ss:$24 sps:$4 sm:$0xff]   ;;  %v2177_v48 = vld [vmem:[%s2395_s5 + $0xa4] ss:$24 sps:$4 sm:$0xff]  }
  0x35   : > { %1110 = vmatprep.subr.bf16.mxu0 %v2066_v50  ;;  %v2156_v50 = vld [vmem:[%s2965_s0 + $0x2c4] ss:$8 sps:$4 sm:$0xff]  }
  0x37   : > { %1018 = vmatpush1.bf16.msra.mxu1 %v2068_v52  ;;  %v2163_v52 = vld [vmem:[%s2965_s0 + $0x2d4] ss:$8 sps:$4 sm:$0xff]  }
  0x38   : > { %1111 = vmatpush1.bf16.msra.mxu0 %v2069_v53  ;;  %1019 = vmatprep.subr.bf16.mxu1 %v2070_v54  ;;  %v2161_v53 = vld [vmem:[%s2965_s0 + $0x2d0] ss:$8 sps:$4 sm:$0xff]   ;;  %v2168_v54 = vld [vmem:[%s2965_s0 + $0x2e4] ss:$8 sps:$4 sm:$0xff]  }
  0x39   : > { %1112 = vmatprep.subr.bf16.mxu0 %v2072_v55  ;;  %v2166_v55 = vld [vmem:[%s2965_s0 + $0x2e0] ss:$8 sps:$4 sm:$0xff]  }
  0x3b   : > { %1020 = vmatpush1.bf16.msra.mxu1 %v2074_v56  ;;  %v2171_v56 = vld [vmem:[%s2965_s0 + $0x2f4] ss:$8 sps:$4 sm:$0xff]  }
  0x3c   : > { %1113 = vmatpush1.bf16.msra.mxu0 %v2075_v57  ;;  %1021 = vmatprep.subr.bf16.mxu1 %v2076_v58  ;;  %v2169_v57 = vld [vmem:[%s2965_s0 + $0x2f0] ss:$8 sps:$4 sm:$0xff]  }
  0x3d   : > { %1114 = vmatprep.subr.bf16.mxu0 %v2078_v59  ;;  %v2172_v58 = vld [vmem:[%s2395_s5 + $0x10] ss:$24 sps:$4 sm:$0xff]   ;;  %v2175_v59 = vld [vmem:[%s2395_s5 + $0xa0] ss:$24 sps:$4 sm:$0xff]  }
  0x3f   : > { %1022 = vmatpush1.bf16.msra.mxu1 %v2080_v60  ;;  %v2178_v60 = vld [vmem:[%s2395_s5 + $0x44] ss:$24 sps:$4 sm:$0xff]  }
  0x40   : > { %1115 = vmatpush1.bf16.msra.mxu0 %v2081_v61  ;;  %1023 = vmatprep.subr.bf16.mxu1 %v2082_v62  ;;  %v2180_v61 = vld [vmem:[%s2395_s5 + $0xd4] ss:$24 sps:$4 sm:$0xff]   ;;  %v2182_v62 = vld [vmem:[%s2395_s5 + $0x40] ss:$24 sps:$4 sm:$0xff]  }
  0x41   : > { %1116 = vmatprep.subr.bf16.mxu0 %v2084_v63  ;;  %v2183_v63 = vld [vmem:[%s2395_s5 + $0xd0] ss:$24 sps:$4 sm:$0xff]  }
  0x43   : > { %1024 = vmatpush1.bf16.msra.mxu1 %v2086_v0  ;;  %v2184_v0 = vld [vmem:[%s2395_s5 + $0x74] ss:$24 sps:$4 sm:$0xff]  }
  0x44   : > { %1117 = vmatpush1.bf16.msra.mxu0 %v2087_v1  ;;  %1895 = vmatprep.subr.bf16.mxu1 %v2096_v2  ;;  %v2186_v1 = vld [vmem:[%s2395_s5 + $0x104] ss:$24 sps:$4 sm:$0xff]  }
  0x45   : > { %1179 = vmatprep.subr.bf16.mxu0 %v2096_v2  ;;  %v2188_v2 = vld [vmem:[%s2395_s5 + $0x70] ss:$24 sps:$4 sm:$0xff]  }
  0x46   : > { %1026 = vmatmul.mubr.bf16.vlgmr.msra.gmra.mrb[0].mxu1 %v2088_v3  ;;  %v2189_v3 = vld [vmem:[%s2395_s5 + $0x100] ss:$24 sps:$4 sm:$0xff]   ;;  %s1757_s5 = sshll.u32 %s2970_s22, 3 }
  0x47   : > { %1119 = vmatmul.mubr.bf16.vlgmr.msra.gmra.mrb[0].mxu0 %v2091_v4  ;;  %1911 = vmatpush1.bf16.msra.mxu1 %v2094_v5  ;;  %s2822_s16 = scalar_lea.vmem %s2967_s2, %s1757_s5 }
  0x48   : > { %1180 = vmatpush1.bf16.msra.mxu0 %v2094_v5  ;;  %1896 = vmatprep.subr.bf16.mxu1 %v2099_v6 }
  0x49   : > { %1181 = vmatprep.subr.bf16.mxu0 %v2099_v6  ;;  %1035 = vmatprep.mubr.bf16.mxu1 %v2109_v7 }
  0x4a   : > { %1128 = vmatprep.mubr.bf16.mxu0 %v2111_v8 }
  0x4b   : > { %1912 = vmatpush1.bf16.msra.mxu1 %v2097_v9 }
  0x4c   : > { %1182 = vmatpush1.bf16.msra.mxu0 %v2097_v9  ;;  %1897 = vmatprep.subr.bf16.mxu1 %v2102_v10 }
  0x4d   : > { %1183 = vmatprep.subr.bf16.mxu0 %v2102_v10 }
  0x4e   : > { %1036 = vmatmul.mubr.bf16.gmra.mrb[4].mxu1 %v2116_v12 }
  0x4f   : > { %1129 = vmatmul.mubr.bf16.gmra.mrb[4].mxu0 %v2117_v13  ;;  %1913 = vmatpush1.bf16.msra.mxu1 %v2100_v11 }
  0x50   : > { %1184 = vmatpush1.bf16.msra.mxu0 %v2100_v11  ;;  %1898 = vmatprep.subr.bf16.mxu1 %v2105_v14 }
  0x51   : > { %1185 = vmatprep.subr.bf16.mxu0 %v2105_v14  ;;  %1045 = vmatprep.mubr.bf16.mxu1 %v2121_v15 }
  0x52   : > { %1138 = vmatprep.mubr.bf16.mxu0 %v2123_v16 }
  0x53   : > { %1914 = vmatpush1.bf16.msra.mxu1 %v2103_v17 }
  0x54   : > { %1186 = vmatpush1.bf16.msra.mxu0 %v2103_v17  ;;  %1899 = vmatprep.subr.bf16.mxu1 %v2108_v18 }
  0x55   : > { %1187 = vmatprep.subr.bf16.mxu0 %v2108_v18 }
  0x56   : > { %1046 = vmatmul.mubr.bf16.gmra.mrb[8].mxu1 %v2128_v19 }
  0x57   : > { %1139 = vmatmul.mubr.bf16.gmra.mrb[8].mxu0 %v2129_v20  ;;  %1915 = vmatpush1.bf16.msra.mxu1 %v2106_v21 }
  0x58   : > { %1188 = vmatpush1.bf16.msra.mxu0 %v2106_v21  ;;  %1900 = vmatprep.subr.bf16.mxu1 %v2115_v22 }
  0x59   : > { %1189 = vmatprep.subr.bf16.mxu0 %v2115_v22  ;;  %1055 = vmatprep.mubr.bf16.mxu1 %v2133_v23 }
  0x5a   : > { %1148 = vmatprep.mubr.bf16.mxu0 %v2135_v24 }
  0x5b   : > { %1916 = vmatpush1.bf16.msra.mxu1 %v2113_v25 }
  0x5c   : > { %1190 = vmatpush1.bf16.msra.mxu0 %v2113_v25  ;;  %1901 = vmatprep.subr.bf16.mxu1 %v2120_v26 }
  0x5d   : > { %1191 = vmatprep.subr.bf16.mxu0 %v2120_v26 }
  0x5e   : > { %1056 = vmatmul.mubr.bf16.gmra.mrb[12].mxu1 %v2140_v27 }
  0x5f   : > { %1149 = vmatmul.mubr.bf16.gmra.mrb[12].mxu0 %v2141_v28  ;;  %1917 = vmatpush1.bf16.msra.mxu1 %v2118_v29 }
  0x60   : > { %1192 = vmatpush1.bf16.msra.mxu0 %v2118_v29  ;;  %1902 = vmatprep.subr.bf16.mxu1 %v2127_v30 }
  0x61   : > { %1193 = vmatprep.subr.bf16.mxu0 %v2127_v30  ;;  %1065 = vmatprep.mubr.bf16.mxu1 %v2145_v31 }
  0x62   : > { %1158 = vmatprep.mubr.bf16.mxu0 %v2147_v32 }
  0x63   : > { %1918 = vmatpush1.bf16.msra.mxu1 %v2125_v33 }
  0x64   : > { %1194 = vmatpush1.bf16.msra.mxu0 %v2125_v33  ;;  %1903 = vmatprep.subr.bf16.mxu1 %v2132_v34 }
  0x65   : > { %1195 = vmatprep.subr.bf16.mxu0 %v2132_v34 }
  0x66   : > { %1066 = vmatmul.mubr.bf16.gmra.mrb[16].mxu1 %v2152_v35 }
  0x67   : > { %1159 = vmatmul.mubr.bf16.gmra.mrb[16].mxu0 %v2153_v36  ;;  %1919 = vmatpush1.bf16.msra.mxu1 %v2130_v37 }
  0x68   : > { %1196 = vmatpush1.bf16.msra.mxu0 %v2130_v37  ;;  %1904 = vmatprep.subr.bf16.mxu1 %v2139_v38 }
  0x69   : > { %1197 = vmatprep.subr.bf16.mxu0 %v2139_v38  ;;  %1075 = vmatprep.mubr.bf16.mxu1 %v2157_v39 }
  0x6a   : > { %1168 = vmatprep.mubr.bf16.mxu0 %v2159_v40 }
  0x6b   : > { %1920 = vmatpush1.bf16.msra.mxu1 %v2137_v41 }
  0x6c   : > { %1198 = vmatpush1.bf16.msra.mxu0 %v2137_v41  ;;  %1905 = vmatprep.subr.bf16.mxu1 %v2144_v42 }
  0x6d   : > { %1199 = vmatprep.subr.bf16.mxu0 %v2144_v42 }
  0x6e   : > { %1076 = vmatmul.mubr.bf16.gmra.mrb[20].mxu1 %v2164_v43 }
  0x6f   : > { %1169 = vmatmul.mubr.bf16.gmra.mrb[20].mxu0 %v2165_v44  ;;  %1921 = vmatpush1.bf16.msra.mxu1 %v2142_v45 }
  0x70   : > { %1200 = vmatpush1.bf16.msra.mxu0 %v2142_v45  ;;  %1906 = vmatprep.subr.bf16.mxu1 %v2151_v46 }
  0x71   : > { %1201 = vmatprep.subr.bf16.mxu0 %v2151_v46  ;;  %1211 = vmatprep.mubr.bf16.mxu0 %v2174_v47 }
  0x72   : > { %1241 = vmatprep.mubr.bf16.mxu1 %v2177_v48 }
  0x73   : > { %1922 = vmatpush1.bf16.msra.mxu1 %v2149_v49 }
  0x74   : > { %1202 = vmatpush1.bf16.msra.mxu0 %v2149_v49  ;;  %1907 = vmatprep.subr.bf16.mxu1 %v2156_v50 }
  0x75   : > { %1203 = vmatprep.subr.bf16.mxu0 %v2156_v50 }
  0x77   : > { %1923 = vmatpush1.bf16.msra.mxu1 %v2154_v51 }
  0x78   : > { %1204 = vmatpush1.bf16.msra.mxu0 %v2154_v51  ;;  %1908 = vmatprep.subr.bf16.mxu1 %v2163_v52 }
  0x79   : > { %1205 = vmatprep.subr.bf16.mxu0 %v2163_v52 }
  0x7b   : > { %1924 = vmatpush1.bf16.msra.mxu1 %v2161_v53 }
  0x7c   : > { %1206 = vmatpush1.bf16.msra.mxu0 %v2161_v53  ;;  %1909 = vmatprep.subr.bf16.mxu1 %v2168_v54 }
  0x7d   : > { %1207 = vmatprep.subr.bf16.mxu0 %v2168_v54 }
  0x7f   : > { %1925 = vmatpush1.bf16.msra.mxu1 %v2166_v55 }
  0x80   : > { %1208 = vmatpush1.bf16.msra.mxu0 %v2166_v55  ;;  %1910 = vmatprep.subr.bf16.mxu1 %v2171_v56 }
  0x81   : > { %1209 = vmatprep.subr.bf16.mxu0 %v2171_v56 }
  0x83   : > { %1926 = vmatpush1.bf16.msra.mxu1 %v2169_v57 }
  0x84   : > { %1210 = vmatpush1.bf16.msra.mxu0 %v2169_v57 }
  0x86   : > { %1242 = vmatmul.mubr.bf16.vlgmr.msra.gmra.mrb[24].mxu1 %v2175_v59 }
  0x87   : > { %1212 = vmatmul.mubr.bf16.vlgmr.msra.gmra.mrb[0].mxu0 %v2172_v58  ;;  %1251 = vmatprep.mubr.bf16.mxu1 %v2180_v61 }
  0x88   : > { %1221 = vmatprep.mubr.bf16.mxu0 %v2178_v60 }
  0x8e   : > { %1252 = vmatmul.mubr.bf16.gmra.mrb[28].mxu1 %v2183_v63 }
  0x8f   : > { %1222 = vmatmul.mubr.bf16.gmra.mrb[4].mxu0 %v2182_v62  ;;  %1261 = vmatprep.mubr.bf16.mxu1 %v2186_v1 }
  0x90   : > { %1231 = vmatprep.mubr.bf16.mxu0 %v2184_v0 }
  0x96   : > { %1262 = vmatmul.mubr.bf16.gmra.mrb[32].mxu1 %v2189_v3 }
  0x97   : > { %1232 = vmatmul.mubr.bf16.gmra.mrb[8].mxu0 %v2188_v2 }
 0x119   : > { %v1027_v4 = vpop.f32.mrb[0].mxu1 }
 0x11a   : > { %v1029_v5 = vpop.f32.mrb[1].mxu1 }
 0x11b   : > { %v1031_v6 = vpop.f32.mrb[2].mxu1 }
 0x11c   : > { %v1033_v7 = vpop.f32.mrb[3].mxu1 }
 0x121   : > { %v2586_v8 = vpop.f32.mrb[4].mxu1 }
 0x122   : > { %v2588_v9 = vpop.f32.mrb[5].mxu1 }
 0x123   : > { %v2590_v10 = vpop.f32.mrb[6].mxu1 }
 0x124   : > { %v2592_v11 = vpop.f32.mrb[7].mxu1 }
 0x129   : > { %v2594_v12 = vpop.f32.mrb[8].mxu1 }
 0x12a   : > { %v2596_v13 = vpop.f32.mrb[9].mxu1 }
 0x12b   : > { %v2598_v14 = vpop.f32.mrb[10].mxu1 }
 0x12c   : > { %v2600_v15 = vpop.f32.mrb[11].mxu1 }
 0x131   : > { %v1057_v16 = vpop.f32.mrb[12].mxu1 }
 0x132   : > { %v1150_v17 = vpop.f32.mrb[12].mxu0  ;;  %v1059_v19 = vpop.f32.mrb[13].mxu1 }
 0x133   : > { %v1151_v18 = vadd.f32 %v1150_v17, %v1057_v16  ;;  %v1152_v20 = vpop.f32.mrb[13].mxu0  ;;  %v1061_v22 = vpop.f32.mrb[14].mxu1 }
 0x134   : > { %v1153_v21 = vadd.f32 %v1152_v20, %v1059_v19  ;;  %v1154_v23 = vpop.f32.mrb[14].mxu0  ;;  %v1063_v25 = vpop.f32.mrb[15].mxu1 }
 0x135   : > { %v1155_v24 = vadd.f32 %v1154_v23, %v1061_v22  ;;  %v1156_v26 = vpop.f32.mrb[15].mxu0 }
 0x136   : > { %v1157_v27 = vadd.f32 %v1156_v26, %v1063_v25 }
 0x139   : > { %v1067_v28 = vpop.f32.mrb[16].mxu1 }
 0x13a   : > { %v1160_v29 = vpop.f32.mrb[16].mxu0  ;;  %v1069_v31 = vpop.f32.mrb[17].mxu1 }
 0x13b   : > { %v1161_v30 = vadd.f32 %v1160_v29, %v1067_v28  ;;  %v1162_v32 = vpop.f32.mrb[17].mxu0  ;;  %v1071_v34 = vpop.f32.mrb[18].mxu1 }
 0x13c   : > { %v1163_v33 = vadd.f32 %v1162_v32, %v1069_v31  ;;  %v1164_v35 = vpop.f32.mrb[18].mxu0  ;;  %v1073_v37 = vpop.f32.mrb[19].mxu1 }
 0x13d   : > { %v1165_v36 = vadd.f32 %v1164_v35, %v1071_v34  ;;  %v1166_v38 = vpop.f32.mrb[19].mxu0 }
 0x13e   : > { %v1167_v39 = vadd.f32 %v1166_v38, %v1073_v37 }
 0x141   : > { %v1077_v40 = vpop.f32.mrb[20].mxu1 }
 0x142   : > { %v1170_v41 = vpop.f32.mrb[20].mxu0  ;;  %v1079_v43 = vpop.f32.mrb[21].mxu1 }
 0x143   : > { %v2602_v42 = vadd.f32 %v1170_v41, %v1077_v40  ;;  %v1172_v44 = vpop.f32.mrb[21].mxu0  ;;  %v1081_v46 = vpop.f32.mrb[22].mxu1 }
 0x144   : > { %v2604_v45 = vadd.f32 %v1172_v44, %v1079_v43  ;;  %v1174_v47 = vpop.f32.mrb[22].mxu0  ;;  %v1083_v49 = vpop.f32.mrb[23].mxu1 }
 0x145   : > { %v2606_v48 = vadd.f32 %v1174_v47, %v1081_v46  ;;  %v1176_v50 = vpop.f32.mrb[23].mxu0 }
 0x146   : > { %v2608_v51 = vadd.f32 %v1176_v50, %v1083_v49 }
 0x159   : > { %v1243_v53 = vpop.f32.mrb[24].mxu1 }
 0x15a   : > { %v1213_v52 = vpop.f32.mrb[0].mxu0  ;;  %v2612_v55 = vadd.f32 %v1243_v53, %v1151_v18  ;;  %v1245_v57 = vpop.f32.mrb[25].mxu1 }
 0x15b   : > { %v2610_v54 = vadd.f32 %v1213_v52, %v1027_v4  ;;  %v1215_v56 = vpop.f32.mrb[1].mxu0  ;;  %v2616_v59 = vadd.f32 %v1245_v57, %v1153_v21  ;;  %v1247_v61 = vpop.f32.mrb[26].mxu1 }
 0x15c   : > { %v2614_v58 = vadd.f32 %v1215_v56, %v1029_v5  ;;  %v1217_v60 = vpop.f32.mrb[2].mxu0  ;;  %v2620_v63 = vadd.f32 %v1247_v61, %v1155_v24  ;;  %v1249_v1 = vpop.f32.mrb[27].mxu1 }
 0x15d   : > { %v2618_v62 = vadd.f32 %v1217_v60, %v1031_v6  ;;  %v1219_v0 = vpop.f32.mrb[3].mxu0  ;;  %v2624_v3 = vadd.f32 %v1249_v1, %v1157_v27  ;;  %v1297_v6 = vsel %vm1272_vm0, %v2616_v59, 0.0 }
 0x15e   : > { %v2622_v2 = vadd.f32 %v1219_v0, %v1033_v7  ;;  %v1273_v4 = vsel %vm1272_vm0, %v2614_v58, 0.0  ;;  %v1298_v23 = vadd.f32 %v1297_v6, %v2612_v55 }
 0x15f   : > { %v1274_v5 = vadd.f32 %v2610_v54, %v1273_v4  ;;  %v1301_v16 = vsel %vm1272_vm0, %v2624_v3, 0.0  ;;  %v2222_v4 = vmov 1  }
 0x160   : > { %v1302_v17 = vadd.f32 %v1301_v16, %v2620_v63  ;;  %v1277_v28 = vsel %vm1272_vm0, %v2622_v2, 0.0  ;;  %1986 = vset.pattern.permute.xlu1 %v2222_v4  ;;  %1987 = vset.pattern.permute.xlu0 %v2222_v4 }
 0x161   : > { %1275 = vadd.xlane.f32.xlu0 %v1274_v5  ;;  %v1253_v19 = vpop.f32.mrb[28].mxu1  ;;  %v1278_v35 = vadd.f32 %v2618_v62, %v1277_v28 }
 0x162   : > { %v1223_v18 = vpop.f32.mrb[4].mxu0  ;;  %v2637_v20 = vadd.f32 %v1253_v19, %v1161_v30  ;;  %v1255_v22 = vpop.f32.mrb[29].mxu1  ;;  %1303 = vadd.xlane.f32.xlu1 %v1302_v17 }
 0x163   : > { %v2635_v7 = vadd.f32 %v1223_v18, %v2586_v8  ;;  %v1225_v21 = vpop.f32.mrb[5].mxu0  ;;  %v2643_v25 = vadd.f32 %v1255_v22, %v1163_v33  ;;  %v1257_v27 = vpop.f32.mrb[30].mxu1 }
 0x164   : > { %v2641_v24 = vadd.f32 %v1225_v21, %v2588_v9  ;;  %v1227_v26 = vpop.f32.mrb[6].mxu0  ;;  %v2650_v29 = vadd.f32 %v1257_v27, %v1165_v36  ;;  %v1259_v31 = vpop.f32.mrb[31].mxu1 }
 0x165   : > { %v2648_v8 = vadd.f32 %v1227_v26, %v2590_v10  ;;  %v1229_v30 = vpop.f32.mrb[7].mxu0  ;;  %1299 = vadd.xlane.f32.xlu0 %v1298_v23  ;;  %v2655_v9 = vadd.f32 %v1259_v31, %v1167_v39  ;;  %v1305_v36 = vsel %vm1272_vm0, %v2643_v25, 0.0 }
 0x166   : > { %v2653_v32 = vadd.f32 %v1229_v30, %v2592_v11  ;;  %v1281_v33 = vsel %vm1272_vm0, %v2641_v24, 0.0  ;;  %v1306_v44 = vadd.f32 %v1305_v36, %v2637_v20 }
 0x167   : > { %v1282_v34 = vadd.f32 %v2635_v7, %v1281_v33 }
 0x168   : > { %v1285_v10 = vsel %vm1272_vm0, %v2653_v32, 0.0 }
 0x169   : > { %1283 = vadd.xlane.f32.xlu1 %v1282_v34  ;;  %1279 = vadd.xlane.f32.xlu0 %v1278_v35  ;;  %v1263_v11 = vpop.f32.mrb[32].mxu1  ;;  %v1286_v43 = vadd.f32 %v2648_v8, %v1285_v10 }
 0x16a   : > { %v1233_v37 = vpop.f32.mrb[8].mxu0  ;;  %v2669_v39 = vadd.f32 %v1263_v11, %v2602_v42  ;;  %v1265_v41 = vpop.f32.mrb[33].mxu1 }
 0x16b   : > { %v2666_v38 = vadd.f32 %v1233_v37, %v2594_v12  ;;  %v1235_v40 = vpop.f32.mrb[9].mxu0  ;;  %v2677_v47 = vadd.f32 %v1265_v41, %v2604_v45  ;;  %v1267_v50 = vpop.f32.mrb[34].mxu1  ;;  %v1309_v12 = vsel %vm1272_vm0, %v2655_v9, 0.0 }
 0x16c   : > { %v2674_v46 = vadd.f32 %v1235_v40, %v2596_v13  ;;  %v1237_v49 = vpop.f32.mrb[10].mxu0  ;;  %v2685_v52 = vadd.f32 %v1267_v50, %v2606_v48  ;;  %v1269_v56 = vpop.f32.mrb[35].mxu1  ;;  %v1310_v60 = vadd.f32 %v1309_v12, %v2650_v29 }
 0x16d   : > { %v2682_v42 = vadd.f32 %v1237_v49, %v2598_v14  ;;  %v1239_v53 = vpop.f32.mrb[11].mxu0  ;;  %1287 = vadd.xlane.f32.xlu1 %v1286_v43  ;;  %1307 = vadd.xlane.f32.xlu0 %v1306_v44  ;;  %v2691_v45 = vadd.f32 %v1269_v56, %v2608_v51  ;;  %v1313_v61 = vsel %vm1272_vm0, %v2677_v47, 0.0 }
 0x16e   : > { %v2688_v13 = vadd.f32 %v1239_v53, %v2600_v15  ;;  %v1289_v57 = vsel %vm1272_vm0, %v2674_v46, 0.0  ;;  %v1314_v51 = vadd.f32 %v1313_v61, %v2669_v39 }
 0x16f   : > { %v1290_v14 = vadd.f32 %v2666_v38, %v1289_v57  ;;  %v1317_v0 = vsel %vm1272_vm0, %v2691_v45, 0.0 }
 0x170   : > { %v1293_v48 = vsel %vm1272_vm0, %v2688_v13, 0.0  ;;  %v1318_v1 = vadd.f32 %v1317_v0, %v2685_v52 }
 0x171   : > { %1311 = vadd.xlane.f32.xlu1 %v1310_v60  ;;  %1291 = vadd.xlane.f32.xlu0 %v1290_v14  ;;  %v1294_v15 = vadd.f32 %v2682_v42, %v1293_v48 }
 0x175   : > { %1295 = vadd.xlane.f32.xlu1 %v1294_v15  ;;  %1315 = vadd.xlane.f32.xlu0 %v1314_v51 }
 0x179   : > { %1319 = vadd.xlane.f32.xlu1 %v1318_v1 }
 0x1ee   : > { %v1276_v5 = vpop.xlane.xlu0 %1275 }
 0x1ef   : > { %v1321_v16 = vmul.f32 0.0069444445, %v1276_v5  ;;  %v1304_v18 = vpop.xlane.xlu1 %1303 }
 0x1f0   : > { %v1328_v23 = vmul.f32 0.0069444445, %v1304_v18 }
 0x1f1   : > { %v2709_v6 = vsub.f32 %v2610_v54, %v1321_v16  ;;  %v2712_v17 = vsub.f32 %v2614_v58, %v1321_v16 }
 0x1f2   : > { %v1300_v19 = vpop.xlane.xlu0 %1299  ;;  %v2728_v10 = vsub.f32 %v2624_v3, %v1328_v23  ;;  %v2745_v40 = vsub.f32 %v2620_v63, %v1328_v23 }
 0x1f3   : > { %v1327_v21 = vmul.f32 0.0069444445, %v1300_v19  ;;  %v1357_v22 = vmul.f32 %v2709_v6, %v2709_v6  ;;  %v1358_v26 = vmul.f32 %v2712_v17, %v2712_v17 }
 0x1f4   : > { %v1372_v50 = vmul.f32 %v2728_v10, %v2728_v10  ;;  %v1371_v61 = vmul.f32 %v2745_v40, %v2745_v40 }
 0x1f5   : > { %v2719_v27 = vsub.f32 %v2612_v55, %v1327_v21  ;;  %v2722_v28 = vsub.f32 %v2616_v59, %v1327_v21  ;;  %v1381_v58 = vsel %vm1272_vm0, %v1358_v26, 0.0 }
 0x1f6   : > { %v1284_v54 = vpop.xlane.xlu1 %1283  ;;  %v1280_v30 = vpop.xlane.xlu0 %1279  ;;  %v1382_v34 = vadd.f32 %v1381_v58, %v1357_v22  ;;  %v1409_v5 = vsel %vm1272_vm0, %v1372_v50, 0.0 }
 0x1f7   : > { %v1323_v31 = vmul.f32 0.0069444445, %v1284_v54  ;;  %v1322_v33 = vmul.f32 0.0069444445, %v1280_v30  ;;  %v1369_v35 = vmul.f32 %v2719_v27, %v2719_v27  ;;  %v1370_v55 = vmul.f32 %v2722_v28, %v2722_v28 }
 0x1f8   : > { %1383 = vadd.xlane.f32.xlu0 %v1382_v34 }
 0x1f9   : > { %v2733_v36 = vsub.f32 %v2635_v7, %v1323_v31  ;;  %v2736_v59 = vsub.f32 %v2641_v24, %v1323_v31  ;;  %v2739_v37 = vsub.f32 %v2618_v62, %v1322_v33  ;;  %v2742_v11 = vsub.f32 %v2622_v2, %v1322_v33 }
 0x1fa   : > { %v1288_v3 = vpop.xlane.xlu1 %1287  ;;  %v1308_v41 = vpop.xlane.xlu0 %1307  ;;  %v1405_v43 = vsel %vm1272_vm0, %v1370_v55, 0.0 }
 0x1fb   : > { %v1324_v44 = vmul.f32 0.0069444445, %v1288_v3  ;;  %v1329_v7 = vmul.f32 0.0069444445, %v1308_v41  ;;  %v1406_v49 = vadd.f32 %v1405_v43, %v1369_v35  ;;  %v1361_v24 = vmul.f32 %v2733_v36, %v2733_v36 }
 0x1fc   : > { %v1362_v62 = vmul.f32 %v2736_v59, %v2736_v59  ;;  %v1359_v2 = vmul.f32 %v2739_v37, %v2739_v37  ;;  %v1360_v63 = vmul.f32 %v2742_v11, %v2742_v11 }
 0x1fd   : > { %v2759_v12 = vsub.f32 %v2653_v32, %v1324_v44  ;;  %v2762_v53 = vsub.f32 %v2637_v20, %v1329_v7  ;;  %v2765_v56 = vsub.f32 %v2643_v25, %v1329_v7  ;;  %1407 = vadd.xlane.f32.xlu0 %v1406_v49  ;;  %v2772_v20 = vsub.f32 %v2648_v8, %v1324_v44  ;;  %v1465_v49 = vld [vmem:[%s2822_s16] sm:$0xff] }
 0x1fe   : > { %v1312_v57 = vpop.xlane.xlu1 %1311  ;;  %v1292_v60 = vpop.xlane.xlu0 %1291  ;;  %v1389_v14 = vsel %vm1272_vm0, %v1362_v62, 0.0  ;;  %v1385_v48 = vsel %vm1272_vm0, %v1360_v63, 0.0  ;;  %v2830_v62 = vld [vmem:[%s2822_s16 + $0x20] sm:$0xff] }
 0x1ff   : > { %v1330_v15 = vmul.f32 0.0069444445, %v1312_v57  ;;  %v1325_v51 = vmul.f32 0.0069444445, %v1292_v60  ;;  %v1390_v32 = vadd.f32 %v1389_v14, %v1361_v24  ;;  %v1386_v0 = vadd.f32 %v1385_v48, %v1359_v2  ;;  %v2826_v24 = vld [vmem:[%s2822_s16 + $0x8] sm:$0xff]  ;;  %v2834_v2 = vld [vmem:[%s2822_s16 + $0x30] sm:$0xff] }
 0x200   : > { %v1373_v25 = vmul.f32 %v2762_v53, %v2762_v53  ;;  %v1374_v1 = vmul.f32 %v2765_v56, %v2765_v56  ;;  %v1364_v8 = vmul.f32 %v2759_v12, %v2759_v12  ;;  %v1363_v30 = vmul.f32 %v2772_v20, %v2772_v20  ;;  %v2838_v63 = vld [vmem:[%s2822_s16 + $0x40] sm:$0xff] }
 0x201   : > { %v2780_v16 = vsub.f32 %v2655_v9, %v1330_v15  ;;  %v2783_v18 = vsub.f32 %v2666_v38, %v1325_v51  ;;  %v2786_v19 = vsub.f32 %v2674_v46, %v1325_v51  ;;  %1391 = vadd.xlane.f32.xlu0 %v1390_v32  ;;  %1387 = vadd.xlane.f32.xlu1 %v1386_v0  ;;  %v2223_v14 = vmov 0  }
 0x202   : > { %v1316_v21 = vpop.xlane.xlu0 %1315  ;;  %v1413_v22 = vsel %vm1272_vm0, %v1374_v1, 0.0  ;;  %v2794_v54 = vsub.f32 %v2650_v29, %v1330_v15  ;;  %v1410_v38 = vadd.f32 %v1409_v5, %v1371_v61  ;;  %v1393_v33 = vsel %vm1272_vm0, %v1364_v8, 0.0  ;;  %v1296_v50 = vpop.xlane.xlu1 %1295 }
 0x203   : > { %v1331_v23 = vmul.f32 0.0069444445, %v1316_v21  ;;  %v1414_v26 = vadd.f32 %v1413_v22, %v1373_v25  ;;  %v1365_v9 = vmul.f32 %v2783_v18, %v2783_v18  ;;  %v1366_v46 = vmul.f32 %v2786_v19, %v2786_v19  ;;  %v2868_v21 = vld [vmem:[%s2822_s16 + $0x18] sm:$0xff]  ;;  %v2872_v22 = vld [vmem:[%s2822_s16 + $0x28] sm:$0xff] }
 0x204   : > { %v1376_v29 = vmul.f32 %v2780_v16, %v2780_v16  ;;  %v1394_v3 = vadd.f32 %v1393_v33, %v1363_v30  ;;  %v1326_v57 = vmul.f32 0.0069444445, %v1296_v50 }
 0x205   : > { %v2801_v58 = vsub.f32 %v2669_v39, %v1331_v23  ;;  %v2804_v31 = vsub.f32 %v2677_v47, %v1331_v23  ;;  %1415 = vadd.xlane.f32.xlu0 %v1414_v26  ;;  %1411 = vadd.xlane.f32.xlu1 %v1410_v38  ;;  %v1397_v34 = vsel %vm1272_vm0, %v1366_v46, 0.0  ;;  %v1375_v47 = vmul.f32 %v2794_v54, %v2794_v54  ;;  %v1472_v23 = vld [vmem:[%s2822_s16 + $0x38] sm:$0xff]  ;;  %v1474_v26 = vld [vmem:[%s2822_s16 + $0x48] sm:$0xff] }
 0x206   : > { %v1398_v35 = vadd.f32 %v1397_v34, %v1365_v9  ;;  %v1417_v43 = vsel %vm1272_vm0, %v1376_v29, 0.0  ;;  %v1320_v60 = vpop.xlane.xlu1 %1319  ;;  %v2842_v48 = vsub.f32 %v2688_v13, %v1326_v57  ;;  %v2845_v15 = vsub.f32 %v2682_v42, %v1326_v57 }
 0x207   : > { %v1377_v55 = vmul.f32 %v2801_v58, %v2801_v58  ;;  %v1378_v39 = vmul.f32 %v2804_v31, %v2804_v31  ;;  %v1418_v7 = vadd.f32 %v1417_v43, %v1375_v47  ;;  %v1332_v61 = vmul.f32 0.0069444445, %v1320_v60 }
 0x208   : > { %v1368_v32 = vmul.f32 %v2842_v48, %v2842_v48  ;;  %v1367_v13 = vmul.f32 %v2845_v15, %v2845_v15 }
 0x209   : > { %1399 = vadd.xlane.f32.xlu0 %v1398_v35  ;;  %v1421_v41 = vsel %vm1272_vm0, %v1378_v39, 0.0  ;;  %1395 = vadd.xlane.f32.xlu1 %v1394_v3  ;;  %v2848_v51 = vsub.f32 %v2691_v45, %v1332_v61  ;;  %v2853_v0 = vsub.f32 %v2685_v52, %v1332_v61  ;;  %v2864_v52 = vld [vmem:[%s2822_s16 + $0x10] sm:$0xff] }
 0x20a   : > { %v1422_v44 = vadd.f32 %v1421_v41, %v1377_v55  ;;  %v1401_v25 = vsel %vm1272_vm0, %v1368_v32, 0.0 }
 0x20b   : > { %v1380_v42 = vmul.f32 %v2848_v51, %v2848_v51  ;;  %v1402_v1 = vadd.f32 %v1401_v25, %v1367_v13  ;;  %v1379_v45 = vmul.f32 %v2853_v0, %v2853_v0 }
 0x20d   : > { %1423 = vadd.xlane.f32.xlu0 %v1422_v44  ;;  %1419 = vadd.xlane.f32.xlu1 %v1418_v7  ;;  %v1425_v5 = vsel %vm1272_vm0, %v1380_v42, 0.0 }
 0x20e   : > { %v1426_v8 = vadd.f32 %v1425_v5, %v1379_v45 }
 0x21e   : > { %1575 = vperm.xlu1 %1986, %v1465_v49  }
 0x223   : > { %1580 = vperm.xlu0 %1987, %v2826_v24  }
 0x227   : > { %1595 = vperm.xlu0 %1987, %v2830_v62  }
 0x22b   : > { %1605 = vperm.xlu0 %1987, %v2834_v2  }
 0x22f   : > { %1615 = vperm.xlu0 %1987, %v2838_v63  }
 0x233   : > { %1988 = vset.pattern.permute.xlu0 %v2223_v14 }
 0x242   : > { %1403 = vadd.xlane.f32.xlu1 %v1402_v1 }
 0x246   : > { %1427 = vadd.xlane.f32.xlu1 %v1426_v8 }
 0x257   : > { %1585 = vperm.xlu1 %1986, %v2864_v52  }
 0x25b   : > { %1590 = vperm.xlu1 %1986, %v2868_v21  }
 0x25f   : > { %1600 = vperm.xlu1 %1986, %v2872_v22  }
 0x263   : > { %1610 = vperm.xlu1 %1986, %v1472_v23  }
 0x267   : > { %1620 = vperm.xlu1 %1986, %v1474_v26  }
 0x26b   : > { %1989 = vset.pattern.permute.xlu1 %v2223_v14 }
 0x285   : > { %v1384_v9 = vpop.xlane.xlu0 %1383 }
 0x286   : > { %v1429_v38 = vmul.f32 0.0069444445, %v1384_v9 }
 0x288   : > { %v1441_v46 = vadd.f32 0.001, %v1429_v38 }
 0x28a   : > { %v1408_v30 = vpop.xlane.xlu0 %1407  ;;  %2190 = vrsqrt.f32 %v1441_v46 }
 0x28b   : > { %v1435_v33 = vmul.f32 0.0069444445, %v1408_v30 }
 0x28d   : > { %v1447_v29 = vadd.f32 0.001, %v1435_v33 }
 0x28e   : > { %v1392_v34 = vpop.xlane.xlu0 %1391  ;;  %v1388_v35 = vpop.xlane.xlu1 %1387 }
 0x28f   : > { %2192 = vrsqrt.f32 %v1447_v29  ;;  %v1430_v55 = vmul.f32 0.0069444445, %v1388_v35  ;;  %v1431_v39 = vmul.f32 0.0069444445, %v1392_v34 }
 0x291   : > { %v1442_v3 = vadd.f32 0.001, %v1430_v55  ;;  %v1443_v7 = vadd.f32 0.001, %v1431_v39 }
 0x292   : > { %v1416_v47 = vpop.xlane.xlu0 %1415  ;;  %v1412_v41 = vpop.xlane.xlu1 %1411 }
 0x293   : > { %2194 = vrsqrt.f32 %v1442_v3  ;;  %v1436_v43 = vmul.f32 0.0069444445, %v1412_v41  ;;  %v1437_v50 = vmul.f32 0.0069444445, %v1416_v47 }
 0x294   : > { %v2191_v44 = vpop.eup %2190 }
 0x295   : > { %v1448_v57 = vadd.f32 0.001, %v1436_v43  ;;  %v1477_v60 = vmul.f32 %v2191_v44, %v1465_v49  ;;  %v1449_v25 = vadd.f32 0.001, %v1437_v50  ;;  %v1475_v50 = vld [vmem:[%s2822_s16 + $0x50] sm:$0xff] }
 0x296   : > { %v1396_v14 = vpop.xlane.xlu1 %1395  ;;  %v1400_v32 = vpop.xlane.xlu0 %1399 }
 0x297   : > { %2196 = vrsqrt.f32 %v1448_v57  ;;  %1491 = vperm.xlu0 %1988, %v1477_v60   ;;  %v1432_v42 = vmul.f32 0.0069444445, %v1396_v14  ;;  %v1433_v8 = vmul.f32 0.0069444445, %v1400_v32 }
 0x298   : > { %2198 = vrsqrt.f32 %v1443_v7 }
 0x299   : > { %v2193_v61 = vpop.eup %2192  ;;  %2200 = vrsqrt.f32 %v1449_v25  ;;  %v1444_v9 = vadd.f32 0.001, %v1432_v42  ;;  %v1445_v33 = vadd.f32 0.001, %v1433_v8  ;;  %v1476_v25 = vld [vmem:[%s2822_s16 + $0x58] sm:$0xff] }
 0x29a   : > { %v1483_v13 = vmul.f32 %v2193_v61, %v2834_v2  ;;  %v1420_v1 = vpop.xlane.xlu1 %1419  ;;  %v1424_v46 = vpop.xlane.xlu0 %1423 }
 0x29b   : > { %v1438_v45 = vmul.f32 0.0069444445, %v1420_v1  ;;  %v1439_v29 = vmul.f32 0.0069444445, %v1424_v46 }
 0x29c   : > { %1521 = vperm.xlu1 %1989, %v1483_v13  }
 0x29d   : > { %v2195_v5 = vpop.eup %2194  ;;  %v1450_v38 = vadd.f32 0.001, %v1438_v45  ;;  %v1451_v35 = vadd.f32 0.001, %v1439_v29 }
 0x29e   : > { %v1478_v49 = vmul.f32 %v2195_v5, %v2826_v24  ;;  %v1576_v57 = vpop.permute.xlu1 %1575 }
 0x29f   : > { %2202 = vrsqrt.f32 %v1450_v38 }
 0x2a0   : > { %1496 = vperm.xlu1 %1989, %v1478_v49   ;;  %2204 = vrsqrt.f32 %v1444_v9 }
 0x2a1   : > { %v2197_v30 = vpop.eup %2196  ;;  %2206 = vrsqrt.f32 %v1445_v33 }
 0x2a2   : > { %v1484_v2 = vmul.f32 %v2197_v30, %v1472_v23  ;;  %v2199_v34 = vpop.eup %2198  ;;  %2208 = vrsqrt.f32 %v1451_v35  ;;  %v1581_v45 = vpop.permute.xlu0 %1580 }
 0x2a3   : > { %v1479_v55 = vmul.f32 %v2199_v34, %v2864_v52  ;;  %v2201_v39 = vpop.eup %2200 }
 0x2a4   : > { %1526 = vperm.xlu1 %1989, %v1484_v2   ;;  %v1485_v24 = vmul.f32 %v2201_v39, %v2838_v63 }
 0x2a6   : > { %v2888_v8 = vpop.permute.xlu0 %1595 }
 0x2a8   : > { %1501 = vperm.xlu1 %1989, %v1479_v55  }
 0x2a9   : > { %v2203_v3 = vpop.eup %2202 }
 0x2aa   : > { %v1486_v47 = vmul.f32 %v2203_v3, %v1474_v26  ;;  %v2205_v41 = vpop.eup %2204 }
 0x2ab   : > { %v1480_v43 = vmul.f32 %v2205_v41, %v2868_v21  ;;  %v2207_v23 = vpop.eup %2206 }
 0x2ac   : > { %1531 = vperm.xlu1 %1989, %v1485_v24   ;;  %1536 = vperm.xlu0 %1988, %v1486_v47   ;;  %v1481_v44 = vmul.f32 %v2207_v23, %v2830_v62  ;;  %v2209_v7 = vpop.eup %2208 }
 0x2ad   : > { %v1487_v52 = vmul.f32 %v2209_v7, %v1475_v50 }
 0x2b0   : > { %1506 = vperm.xlu1 %1989, %v1480_v43  }
 0x2b4   : > { %1511 = vperm.xlu1 %1989, %v1481_v44  }
 0x2b8   : > { %1541 = vperm.xlu1 %1989, %v1487_v52  }
 0x2cf   : > { %v1404_v60 = vpop.xlane.xlu1 %1403 }
 0x2d0   : > { %v1434_v14 = vmul.f32 0.0069444445, %v1404_v60 }
 0x2d2   : > { %v1446_v63 = vadd.f32 0.001, %v1434_v14 }
 0x2d3   : > { %v1428_v26 = vpop.xlane.xlu1 %1427 }
 0x2d4   : > { %2210 = vrsqrt.f32 %v1446_v63  ;;  %v1440_v61 = vmul.f32 0.0069444445, %v1428_v26 }
 0x2d6   : > { %v1452_v32 = vadd.f32 0.001, %v1440_v61 }
 0x2d7   : > { %v1586_v1 = vpop.permute.xlu1 %1585 }
 0x2d8   : > { %2212 = vrsqrt.f32 %v1452_v32 }
 0x2db   : > { %v1591_v5 = vpop.permute.xlu1 %1590 }
 0x2de   : > { %v2211_v21 = vpop.eup %2210 }
 0x2df   : > { %v1482_v13 = vmul.f32 %v2211_v21, %v2872_v22  ;;  %v2890_v9 = vpop.permute.xlu1 %1600  ;;  %v1606_v22 = vpop.permute.xlu0 %1605 }
 0x2e1   : > { %1516 = vperm.xlu1 %1989, %v1482_v13  }
 0x2e2   : > { %v2213_v62 = vpop.eup %2212 }
 0x2e3   : > { %v1488_v42 = vmul.f32 %v2213_v62, %v1476_v25  ;;  %v1611_v38 = vpop.permute.xlu1 %1610  ;;  %v1616_v46 = vpop.permute.xlu0 %1615 }
 0x2e5   : > { %1546 = vperm.xlu0 %1988, %v1488_v42   ;;  %1991 = vset.pattern.permute.xlu1 %v2222_v4 }
 0x2e6   : > { %1630 = vperm.xlu1 %1991, %v1476_v25  }
 0x2e7   : > { %v1621_v49 = vpop.permute.xlu1 %1620 }
 0x2e9   : > { %1990 = vset.pattern.permute.xlu0 %v2222_v4 }
 0x2ea   : > { %1625 = vperm.xlu0 %1990, %v1475_v50  }
 0x316   : > { %v1492_v30 = vpop.permute.xlu0 %1491 }
 0x317   : > { %v1549_v33 = vmul.f32 %v1492_v30, %v2709_v6  ;;  %v1550_v29 = vmul.f32 %v1492_v30, %v2712_v17 }
 0x319   : > { %v1633_v4 = vadd.f32 %v1576_v57, %v1549_v33  ;;  %v1634_v2 = vadd.f32 %v1576_v57, %v1550_v29 }
 0x31b   : > { %v1522_v34 = vpop.permute.xlu1 %1521  ;;  %1657 = vst [vmem:[%s2898_s20] sm:$0xff] %v1633_v4  ;;  %1658 = vst.msk [vmem:[%s2898_s20 + $0x8] sm:$0xff] %vm1272_vm0, %v1634_v2 }
 0x31c   : > { %v1561_v6 = vmul.f32 %v1522_v34, %v2719_v27  ;;  %v1562_v17 = vmul.f32 %v1522_v34, %v2722_v28 }
 0x31e   : > { %v1645_v35 = vadd.f32 %v1606_v22, %v1561_v6  ;;  %v1646_v55 = vadd.f32 %v1606_v22, %v1562_v17 }
 0x31f   : > { %v1497_v39 = vpop.permute.xlu1 %1496 }
 0x320   : > { %1669 = vst [vmem:[%s2898_s20 + $0x60] sm:$0xff] %v1645_v35  ;;  %1670 = vst.msk [vmem:[%s2898_s20 + $0x68] sm:$0xff] %vm1272_vm0, %v1646_v55  ;;  %v1551_v3 = vmul.f32 %v1497_v39, %v2739_v37  ;;  %v1552_v24 = vmul.f32 %v1497_v39, %v2742_v11 }
 0x322   : > { %v1635_v47 = vadd.f32 %v1581_v45, %v1551_v3  ;;  %v1636_v41 = vadd.f32 %v1581_v45, %v1552_v24 }
 0x323   : > { %v1527_v43 = vpop.permute.xlu1 %1526 }
 0x324   : > { %1659 = vst [vmem:[%s2898_s20 + $0x10] sm:$0xff] %v1635_v47  ;;  %1660 = vst.msk [vmem:[%s2898_s20 + $0x18] sm:$0xff] %vm1272_vm0, %v1636_v41  ;;  %v1563_v27 = vmul.f32 %v1527_v43, %v2745_v40  ;;  %v1564_v28 = vmul.f32 %v1527_v43, %v2728_v10 }
 0x326   : > { %v1647_v23 = vadd.f32 %v1611_v38, %v1563_v27  ;;  %v1648_v44 = vadd.f32 %v1611_v38, %v1564_v28 }
 0x327   : > { %v1502_v7 = vpop.permute.xlu1 %1501 }
 0x328   : > { %1671 = vst [vmem:[%s2898_s20 + $0x70] sm:$0xff] %v1647_v23  ;;  %1672 = vst.msk [vmem:[%s2898_s20 + $0x78] sm:$0xff] %vm1272_vm0, %v1648_v44  ;;  %v1553_v37 = vmul.f32 %v1502_v7, %v2733_v36  ;;  %v1554_v11 = vmul.f32 %v1502_v7, %v2736_v59 }
 0x32a   : > { %v1637_v50 = vadd.f32 %v1586_v1, %v1553_v37  ;;  %v1638_v52 = vadd.f32 %v1586_v1, %v1554_v11 }
 0x32b   : > { %v1537_v57 = vpop.permute.xlu0 %1536  ;;  %v1532_v40 = vpop.permute.xlu1 %1531 }
 0x32c   : > { %1661 = vst [vmem:[%s2898_s20 + $0x20] sm:$0xff] %v1637_v50  ;;  %1662 = vst.msk [vmem:[%s2898_s20 + $0x28] sm:$0xff] %vm1272_vm0, %v1638_v52  ;;  %v1567_v10 = vmul.f32 %v1537_v57, %v2794_v54  ;;  %v1568_v60 = vmul.f32 %v1537_v57, %v2780_v16  ;;  %v1565_v14 = vmul.f32 %v1532_v40, %v2762_v53 }
 0x32d   : > { %v1566_v36 = vmul.f32 %v1532_v40, %v2765_v56 }
 0x32e   : > { %v1651_v59 = vadd.f32 %v1621_v49, %v1567_v10  ;;  %v1652_v63 = vadd.f32 %v1621_v49, %v1568_v60  ;;  %v1649_v26 = vadd.f32 %v1616_v46, %v1565_v14 }
 0x32f   : > { %v1650_v61 = vadd.f32 %v1616_v46, %v1566_v36  ;;  %v1507_v32 = vpop.permute.xlu1 %1506 }
 0x330   : > { %1675 = vst [vmem:[%s2898_s20 + $0x90] sm:$0xff] %v1651_v59  ;;  %1676 = vst.msk [vmem:[%s2898_s20 + $0x98] sm:$0xff] %vm1272_vm0, %v1652_v63  ;;  %v1555_v16 = vmul.f32 %v1507_v32, %v2772_v20  ;;  %v1556_v53 = vmul.f32 %v1507_v32, %v2759_v12 }
 0x331   : > { %1673 = vst [vmem:[%s2898_s20 + $0x80] sm:$0xff] %v1649_v26  ;;  %1674 = vst.msk [vmem:[%s2898_s20 + $0x88] sm:$0xff] %vm1272_vm0, %v1650_v61 }
 0x332   : > { %v1639_v54 = vadd.f32 %v1591_v5, %v1555_v16  ;;  %v1640_v56 = vadd.f32 %v1591_v5, %v1556_v53 }
 0x333   : > { %v1512_v21 = vpop.permute.xlu1 %1511 }
 0x334   : > { %1663 = vst [vmem:[%s2898_s20 + $0x30] sm:$0xff] %v1639_v54  ;;  %1664 = vst.msk [vmem:[%s2898_s20 + $0x38] sm:$0xff] %vm1272_vm0, %v1640_v56  ;;  %v1557_v13 = vmul.f32 %v1512_v21, %v2783_v18  ;;  %v1558_v25 = vmul.f32 %v1512_v21, %v2786_v19 }
 0x336   : > { %v1641_v62 = vadd.f32 %v2888_v8, %v1557_v13  ;;  %v1642_v42 = vadd.f32 %v2888_v8, %v1558_v25 }
 0x337   : > { %v1542_v12 = vpop.permute.xlu1 %1541 }
 0x338   : > { %1665 = vst [vmem:[%s2898_s20 + $0x40] sm:$0xff] %v1641_v62  ;;  %1666 = vst.msk [vmem:[%s2898_s20 + $0x48] sm:$0xff] %vm1272_vm0, %v1642_v42 }
 0x360   : > { %v1517_v20 = vpop.permute.xlu1 %1516 }
 0x361   : > { %v1559_v1 = vmul.f32 %v1517_v20, %v2845_v15  ;;  %v1560_v45 = vmul.f32 %v1517_v20, %v2842_v48  ;;  %v1569_v15 = vmul.f32 %v1542_v12, %v2801_v58  ;;  %v1570_v48 = vmul.f32 %v1542_v12, %v2804_v31 }
 0x363   : > { %v1643_v5 = vadd.f32 %v2890_v9, %v1559_v1  ;;  %v1644_v18 = vadd.f32 %v2890_v9, %v1560_v45 }
 0x364   : > { %v1547_v19 = vpop.permute.xlu0 %1546 }
 0x365   : > { %1667 = vst [vmem:[%s2898_s20 + $0x50] sm:$0xff] %v1643_v5  ;;  %1668 = vst.msk [vmem:[%s2898_s20 + $0x58] sm:$0xff] %vm1272_vm0, %v1644_v18  ;;  %v1571_v8 = vmul.f32 %v1547_v19, %v2853_v0  ;;  %v1572_v22 = vmul.f32 %v1547_v19, %v2848_v51  ;;  %v1631_v38 = vpop.permute.xlu1 %1630 }
 0x367   : > { %v1655_v46 = vadd.f32 %v1631_v38, %v1571_v8  ;;  %v1656_v49 = vadd.f32 %v1631_v38, %v1572_v22 }
 0x369   : > { %1679 = vst [vmem:[%s2898_s20 + $0xb0] sm:$0xff] %v1655_v46  ;;  %1680 = vst.msk [vmem:[%s2898_s20 + $0xb8] sm:$0xff] %vm1272_vm0, %v1656_v49  ;;  %v1626_v9 = vpop.permute.xlu0 %1625 }
 0x36a   : > { %v1653_v30 = vadd.f32 %v1626_v9, %v1569_v15  ;;  %v1654_v33 = vadd.f32 %v1626_v9, %v1570_v48 }
 0x36c   : > { %1677 = vst [vmem:[%s2898_s20 + $0xa0] sm:$0xff] %v1653_v30  ;;  %1678 = vst.msk [vmem:[%s2898_s20 + $0xa8] sm:$0xff] %vm1272_vm0, %v1654_v33 }
 0x36d PF: > { %s13_s12 = sadd.s32 1, %s2220_s12  }
 0x36e   : > { %p10_p4 = scmp.ge.s32.totalorder %s13_s12, 4  }
 0x370   :  { %12 = sbr.rel (!%p10_p4) target bundleno = 1 (0x1), region = 65 }

</bundles_post_ra>
